<compile_context>
chip_gen: v6e
topology: v6e:2x2x1
jax: 0.10.0
libtpu: 0.0.40
codegen_flags: <defaults>
</compile_context>

<pallas_src>
import math

import jax
import jax.numpy as jnp
from jax.experimental import pallas as pl
from jax.experimental.pallas import tpu as pltpu

_SQRT_2_OVER_PI = math.sqrt(2.0 / math.pi)


def _gelu_tanh(x):
    # GELU(tanh approximation), evaluated in fp32.
    return 0.5 * x * (1.0 + jnp.tanh(_SQRT_2_OVER_PI * (x + 0.044715 * x * x * x)))


def feedforward_kernel(x_ref, w1_ref, b1_ref, w2_ref, b2_ref, o_ref):
    x = x_ref[...]                                          # (bm, D) fp32
    # Linear 1: bf16 operands into the MXU, fp32 accumulation, fp32 bias add.
    h = jnp.dot(x.astype(jnp.bfloat16), w1_ref[...],
                preferred_element_type=jnp.float32) + b1_ref[...]
    # tanh-GELU in fp32 (VPU + EUP tanh).
    h = _gelu_tanh(h)
    # Linear 2: bf16 operands, fp32 accumulation, fp32 bias add.
    o = jnp.dot(h.astype(jnp.bfloat16), w2_ref[...],
                preferred_element_type=jnp.float32) + b2_ref[...]
    o_ref[...] = o.astype(o_ref.dtype)


def feedforward(x, w1, b1, w2, b2, *, block_m=512):
    """FeedForward forward pass.

    x:  [..., D]  fp32 activations
    w1: [D, 4D]   bf16 (pre-transposed [in, out])
    b1: [1, 4D]   fp32
    w2: [4D, D]   bf16 (pre-transposed [in, out])
    b2: [1, D]    fp32
    """
    orig_shape = x.shape
    D = orig_shape[-1]
    Dh = w1.shape[1]
    x2 = x.reshape(-1, D)                 # flatten batch/seq -> lane-dense row slab
    M = x2.shape[0]
    bm = M if M <= block_m else block_m   # collapse the grid for small inputs
    grid = (pl.cdiv(M, bm),)

    out = pl.pallas_call(
        feedforward_kernel,
        out_shape=jax.ShapeDtypeStruct((M, D), jnp.float32),
        grid=grid,
        in_specs=[
            pl.BlockSpec((bm, D), lambda i: (i, 0)),   # activations: tiled over rows
            # Constant-index weight/bias blocks stay resident across grid steps.
            # TODO(synk): on v7x, single-buffer these constant-index specs
            # (pipeline_mode=pl.Buffered(1)) and tile the 4D hidden dim with an
            # extra "arbitrary" grid axis + fp32 accumulator scratch once shapes
            # outgrow the 64 MiB per-core VMEM.
            pl.BlockSpec((D, Dh), lambda i: (0, 0)),   # W1
            pl.BlockSpec((1, Dh), lambda i: (0, 0)),   # b1 (2-D row, broadcasts in-register)
            pl.BlockSpec((Dh, D), lambda i: (0, 0)),   # W2
            pl.BlockSpec((1, D), lambda i: (0, 0)),    # b2
        ],
        out_specs=pl.BlockSpec((bm, D), lambda i: (i, 0)),
        compiler_params=pltpu.CompilerParams(
            dimension_semantics=("parallel",)),
    )(x2, w1, b1, w2, b2)
    return out.reshape(orig_shape)


# ---------------- pure-JAX reference (mirrors the PyTorch forward, fp32) ----------------
def reference(x, w1_f32, b1, w2_f32, b2):
    h = x @ w1_f32 + b1
    h = 0.5 * h * (1.0 + jnp.tanh(jnp.sqrt(2.0 / jnp.pi) * (h + 0.044715 * h ** 3)))
    return h @ w2_f32 + b2


if __name__ == "__main__":
    # config: embedding_dim = 32; input is a [batch, seq, D] activation slab.
    B, T, D = 2, 8, 32
    Dh = 4 * D

    key = jax.random.PRNGKey(0)
    k0, k1, k2, k3, k4 = jax.random.split(key, 5)
    x = jax.random.normal(k0, (B, T, D), jnp.float32)

    w1 = 0.02 * jax.random.normal(k1, (D, Dh), jnp.float32)   # [in, out]
    b1 = 0.02 * jax.random.normal(k2, (1, Dh), jnp.float32)
    w2 = 0.02 * jax.random.normal(k3, (Dh, D), jnp.float32)   # [in, out]
    b2 = 0.02 * jax.random.normal(k4, (1, D), jnp.float32)

    out = jax.block_until_ready(
        feedforward(x, w1.astype(jnp.bfloat16), b1, w2.astype(jnp.bfloat16), b2))
    ref = reference(x.reshape(-1, D), w1, b1, w2, b2).reshape(B, T, D)

    assert out.shape == (B, T, D)
    # bf16 MXU operands vs fp32 reference -> loosened tolerance.
    assert jnp.allclose(out, ref, atol=2e-2, rtol=2e-2), "mismatch vs reference"
    print("KERNEL_OK")
</pallas_src>

<mosaic_0001>
module attributes {stable_mosaic.version = 11 : i64} {
  func.func @feedforward_kernel(%arg0: i32, %arg1: memref<16x32xf32, #tpu.memory_space<vmem>>, %arg2: memref<32x128xbf16, #tpu.memory_space<vmem>>, %arg3: memref<1x128xf32, #tpu.memory_space<vmem>>, %arg4: memref<128x32xbf16, #tpu.memory_space<vmem>>, %arg5: memref<1x32xf32, #tpu.memory_space<vmem>>, %arg6: memref<16x32xf32, #tpu.memory_space<vmem>>) attributes {dimension_semantics = [#tpu.dimension_semantics<parallel>], iteration_bounds = array<i64: 1>, scalar_prefetch = 0 : i64, scratch_operands = 0 : i64, tpu.core_type = #tpu.core_type<tc>, window_params = [{transform_indices = @transform_0, window_bounds = array<i64: 16, 32>}, {pipeline_mode = #tpu.pipeline_mode<synchronous>, transform_indices = @transform_1, window_bounds = array<i64: 32, 128>}, {pipeline_mode = #tpu.pipeline_mode<synchronous>, transform_indices = @transform_2, window_bounds = array<i64: 1, 128>}, {pipeline_mode = #tpu.pipeline_mode<synchronous>, transform_indices = @transform_3, window_bounds = array<i64: 128, 32>}, {pipeline_mode = #tpu.pipeline_mode<synchronous>, transform_indices = @transform_4, window_bounds = array<i64: 1, 32>}, {transform_indices = @transform_5, window_bounds = array<i64: 16, 32>}]} {
    %c0 = arith.constant 0 : index
    %c0_0 = arith.constant 0 : index
    %0 = vector.load %arg1[%c0, %c0_0] : memref<16x32xf32, #tpu.memory_space<vmem>>, vector<16x32xf32>
    %1 = arith.truncf %0 : vector<16x32xf32> to vector<16x32xbf16>
    %c0_1 = arith.constant 0 : index
    %c0_2 = arith.constant 0 : index
    %2 = vector.load %arg2[%c0_1, %c0_2] : memref<32x128xbf16, #tpu.memory_space<vmem>>, vector<32x128xbf16>
    %cst = arith.constant dense<0.000000e+00> : vector<16x128xf32>
    %3 = tpu.matmul %1, %2, %cst {dimension_numbers = #tpu.dot_dimension_numbers<[1], [0], [0], [1], [0, 0, 1, 1], [], []>} : vector<16x32xbf16>, vector<32x128xbf16>, vector<16x128xf32> -> vector<16x128xf32>
    %c0_3 = arith.constant 0 : index
    %c0_4 = arith.constant 0 : index
    %4 = vector.load %arg3[%c0_3, %c0_4] : memref<1x128xf32, #tpu.memory_space<vmem>>, vector<1x128xf32>
    %5 = vector.broadcast %4 : vector<1x128xf32> to vector<16x128xf32>
    %6 = arith.addf %3, %5 : vector<16x128xf32>
    %cst_5 = arith.constant 5.000000e-01 : f32
    %7 = vector.broadcast %cst_5 : f32 to vector<16x128xf32>
    %8 = arith.mulf %7, %6 : vector<16x128xf32>
    %cst_6 = arith.constant 4.471500e-02 : f32
    %9 = vector.broadcast %cst_6 : f32 to vector<16x128xf32>
    %10 = arith.mulf %9, %6 : vector<16x128xf32>
    %11 = arith.mulf %10, %6 : vector<16x128xf32>
    %12 = arith.mulf %11, %6 : vector<16x128xf32>
    %13 = arith.addf %6, %12 : vector<16x128xf32>
    %cst_7 = arith.constant 0.797884583 : f32
    %14 = vector.broadcast %cst_7 : f32 to vector<16x128xf32>
    %15 = arith.mulf %14, %13 : vector<16x128xf32>
    %16 = math.tanh %15 : vector<16x128xf32>
    %cst_8 = arith.constant 1.000000e+00 : f32
    %17 = vector.broadcast %cst_8 : f32 to vector<16x128xf32>
    %18 = arith.addf %17, %16 : vector<16x128xf32>
    %19 = arith.mulf %8, %18 : vector<16x128xf32>
    %20 = arith.truncf %19 : vector<16x128xf32> to vector<16x128xbf16>
    %c0_9 = arith.constant 0 : index
    %c0_10 = arith.constant 0 : index
    %21 = vector.load %arg4[%c0_9, %c0_10] : memref<128x32xbf16, #tpu.memory_space<vmem>>, vector<128x32xbf16>
    %cst_11 = arith.constant dense<0.000000e+00> : vector<16x32xf32>
    %22 = tpu.matmul %20, %21, %cst_11 {dimension_numbers = #tpu.dot_dimension_numbers<[1], [0], [0], [1], [0, 0, 1, 1], [], []>} : vector<16x128xbf16>, vector<128x32xbf16>, vector<16x32xf32> -> vector<16x32xf32>
    %c0_12 = arith.constant 0 : index
    %c0_13 = arith.constant 0 : index
    %23 = vector.load %arg5[%c0_12, %c0_13] : memref<1x32xf32, #tpu.memory_space<vmem>>, vector<1x32xf32>
    %24 = vector.broadcast %23 : vector<1x32xf32> to vector<16x32xf32>
    %25 = arith.addf %22, %24 : vector<16x32xf32>
    %c0_14 = arith.constant 0 : index
    %c0_15 = arith.constant 0 : index
    %26 = vector.load %arg6[%c0_14, %c0_15] : memref<16x32xf32, #tpu.memory_space<vmem>>, vector<16x32xf32>
    tpu.vector_store %arg6[%c0_14, %c0_15], %25 {strides = array<i32>} : memref<16x32xf32, #tpu.memory_space<vmem>>, vector<16x32xf32>,
    return
  }
  func.func @transform_0(%arg0: i32) -> (i32, i32) {
    %c0_i32 = arith.constant 0 : i32
    %c0_i32_0 = arith.constant 0 : i32
    return %arg0, %c0_i32 : i32, i32
  }
  func.func @transform_1(%arg0: i32) -> (i32, i32) {
    %c0_i32 = arith.constant 0 : i32
    %c0_i32_0 = arith.constant 0 : i32
    %c0_i32_1 = arith.constant 0 : i32
    return %c0_i32, %c0_i32_0 : i32, i32
  }
  func.func @transform_2(%arg0: i32) -> (i32, i32) {
    %c0_i32 = arith.constant 0 : i32
    %c0_i32_0 = arith.constant 0 : i32
    %c0_i32_1 = arith.constant 0 : i32
    return %c0_i32, %c0_i32_0 : i32, i32
  }
  func.func @transform_3(%arg0: i32) -> (i32, i32) {
    %c0_i32 = arith.constant 0 : i32
    %c0_i32_0 = arith.constant 0 : i32
    %c0_i32_1 = arith.constant 0 : i32
    return %c0_i32, %c0_i32_0 : i32, i32
  }
  func.func @transform_4(%arg0: i32) -> (i32, i32) {
    %c0_i32 = arith.constant 0 : i32
    %c0_i32_0 = arith.constant 0 : i32
    %c0_i32_1 = arith.constant 0 : i32
    return %c0_i32, %c0_i32_0 : i32, i32
  }
  func.func @transform_5(%arg0: i32) -> (i32, i32) {
    %c0_i32 = arith.constant 0 : i32
    %c0_i32_0 = arith.constant 0 : i32
    return %arg0, %c0_i32 : i32, i32
  }
}

</mosaic_0001>

<bundles_post_ra>
// kernel: tpu_custom_call.1
= control target key start
LH: loop header
LB: loop body
LE: loop exit
PB: predicated region body
PF: predicated region fallthrough
CT: control target
= control target key end

     0   :  { %v336_v1 = vmov 0.0   ;;  %vm337_vm0 = vmmov 0   ;;  %vm48_vm1 = vcmask 261120   ;;  %s419_s0 = inlined_call_operand.vmem [shape: f32[16,32], index: 0, kind: input, shape index: {}]   ;;  %s420_s1 = inlined_call_operand.vmem [shape: bf16[32,128], index: 1, kind: input, shape index: {}]   ;;  %s421_s2 = inlined_call_operand.vmem [shape: f32[1,128], index: 2, kind: input, shape index: {}]   ;;  %s422_s3 = inlined_call_operand.vmem [shape: bf16[128,32], index: 3, kind: input, shape index: {}]   ;;  %s423_s4 = inlined_call_operand.vmem [shape: f32[1,32], index: 4, kind: input, shape index: {}]   ;;  %s424_s5 = inlined_call_operand.hbm [shape: f32[16,32], index: 5, kind: output, shape index: {}]  }
   0x1   :  { %v300_v0 = vld [vmem:[%s420_s1 + $0x8] sm:$0xff]   ;;  %267 = vmatprep.subr.bf16.mxu0 %v336_v1  ;;  %275 = vmatprep.subr.bf16.mxu1 %v336_v1  ;;  %v301_v2 = vld [vmem:[%s420_s1] sm:$0xff]  }
   0x2   :  { %268 = vmatpush3.bf16.msra.mxu0 %v300_v0  ;;  %271 = vmatprep.mubr.msk.bf16.mxu0 %vm337_vm0, %v336_v1  ;;  %v22_v3 = vld [vmem:[%s419_s0] sm:$0xff]  ;;  %v23_v4 = vld [vmem:[%s419_s0 + $0x8] sm:$0xff] }
   0x3   :  { %269 = vmatprep.subr.bf16.mxu0 %v336_v1  ;;  %291 = vmatprep.mubr.msk.bf16.mxu1 %vm337_vm0, %v336_v1  ;;  %v24_v5 = vpack.c.bf16 %v23_v4, %v22_v3 }
   0x6   :  { %270 = vmatpush3.bf16.msra.mxu0 %v301_v2 }
   0x7   :  { %10 = vsyncpa [#allocation3], 0  ;;  %v302_v6 = vld [vmem:[%s422_s3 + $0x38] sm:$0xff]   ;;  %v303_v7 = vld [vmem:[%s422_s3 + $0x30] sm:$0xff]   ;;  %s338_s17 = smov [#allocation2]  }
   0x8   :  { %276 = vmatpush3.bf16.msra.mxu1 %v302_v6  ;;  %v304_v8 = vld [vmem:[%s422_s3 + $0x28] sm:$0xff]   ;;  %v305_v9 = vld [vmem:[%s422_s3 + $0x20] sm:$0xff]   ;;  %v306_v10 = vld [vmem:[%s422_s3 + $0x18] sm:$0xff]   ;;  %s231_s18 = sshll.u32 %s338_s17, 4  ;;  %s232_s18 = int_to_ptr.vmem [resolvable:$true] %s231_s18 }
   0x9   :  { %272 = vmatmul.mubr.msk.bf16.vlgmr.msra.gmra.mxu0 %vm48_vm1, %v24_v5  ;;  %277 = vmatprep.subr.bf16.mxu1 %v336_v1  ;;  %v307_v11 = vld [vmem:[%s422_s3 + $0x10] sm:$0xff]   ;;  %v308_v12 = vld [vmem:[%s422_s3 + $0x8] sm:$0xff]   ;;  %v309_v13 = vld [vmem:[%s422_s3] sm:$0xff]   ;;  %s314_s19 = scalar_lea.vmem %s232_s18, 256  ;;  %p319_p1 = scmp.lt.s32.totalorder %s232_s18, %s232_s18 }
   0xa   :  { %v242_v14 = vld [vmem:[%s421_s2] ss:$0 sm:$0xff]  ;;  %p315_p0 = scmp.ne.s32.totalorder %s232_s18, %s314_s19  ;;  %p320_p2 = scmp.lt.s32.totalorder %s314_s19, %s314_s19 }
   0xb   :  { %v246_v40 = vld [vmem:[%s423_s4] ss:$0 sm:$0xff] }
   0xc   :  { %278 = vmatpush3.bf16.msra.mxu1 %v303_v7  ;;  %p321_p3 = por %p320_p2, %p319_p1 }
   0xd   :  { %279 = vmatprep.subr.bf16.mxu1 %v336_v1 }
   0xe   :  { %p322_p4 = pnand %p321_p3, %p315_p0 }
  0x10   :  { %280 = vmatpush3.bf16.msra.mxu1 %v304_v8 }
  0x11   :  { %281 = vmatprep.subr.bf16.mxu1 %v336_v1 }
  0x14   :  { %282 = vmatpush3.bf16.msra.mxu1 %v305_v9 }
  0x15   :  { %283 = vmatprep.subr.bf16.mxu1 %v336_v1 }
  0x18   :  { %284 = vmatpush3.bf16.msra.mxu1 %v306_v10 }
  0x19   :  { %285 = vmatprep.subr.bf16.mxu1 %v336_v1 }
  0x1c   :  { %286 = vmatpush3.bf16.msra.mxu1 %v307_v11 }
  0x1d   :  { %287 = vmatprep.subr.bf16.mxu1 %v336_v1 }
  0x20   :  { %288 = vmatpush3.bf16.msra.mxu1 %v308_v12 }
  0x21   :  { %289 = vmatprep.subr.bf16.mxu1 %v336_v1 }
  0x24   :  { %290 = vmatpush3.bf16.msra.mxu1 %v309_v13 }
  0xc9   :  { %v86_v15 = vpop.f32.mrf.mxu0 }
  0xca   :  { %v87_v16 = vadd.f32 %v242_v14, %v86_v15 }
  0xcb   :  { %v273_v17 = vpop.f32.mrf.mxu0 }
  0xcc   :  { %v95_v18 = vmul.f32 0.044715, %v87_v16  ;;  %v93_v34 = vmul.f32 0.5, %v87_v16 }
  0xcd   :  { %v89_v19 = vpop.f32.mrf.mxu0 }
  0xce   :  { %v97_v20 = vmul.f32 %v95_v18, %v87_v16  ;;  %v90_v21 = vadd.f32 %v242_v14, %v89_v19 }
  0xcf   :  { %v274_v22 = vpop.f32.mrf.mxu0 }
  0xd0   :  { %v99_v23 = vmul.f32 %v97_v20, %v87_v16  ;;  %v96_v24 = vmul.f32 0.044715, %v90_v21  ;;  %v94_v35 = vmul.f32 0.5, %v90_v21 }
  0xd2   :  { %v98_v25 = vmul.f32 %v96_v24, %v90_v21  ;;  %v101_v26 = vadd.f32 %v99_v23, %v87_v16 }
  0xd4   :  { %v100_v27 = vmul.f32 %v98_v25, %v90_v21  ;;  %v103_v28 = vmul.f32 0.7978846, %v101_v26 }
  0xd6   :  { %v102_v29 = vadd.f32 %v100_v27, %v90_v21  ;;  %310 = vtanh.f32 %v103_v28 }
  0xd8   :  { %v104_v30 = vmul.f32 0.7978846, %v102_v29 }
  0xda   :  { %312 = vtanh.f32 %v104_v30 }
  0xe3   :  { %v311_v31 = vpop.eup %310 }
  0xe4   :  { %v107_v32 = vadd.f32 1.0, %v311_v31 }
  0xe6   :  { %v109_v37 = vmul.f32 %v107_v32, %v93_v34 }
  0xe7   :  { %v313_v33 = vpop.eup %312 }
  0xe8   :  { %v108_v36 = vadd.f32 1.0, %v313_v33 }
  0xea   :  { %v110_v38 = vmul.f32 %v108_v36, %v94_v35 }
  0xec   :  { %v111_v39 = vpack.c.bf16 %v110_v38, %v109_v37 }
  0xee   :  { %292 = vmatmul.mubr.bf16.vlgmr.msra.gmra.mxu1 %v111_v39 }
 0x1ae   :  { %v217_v41 = vpop.f32.mrf.mxu1 }
 0x1af   :  { %v218_v42 = vadd.f32 %v246_v40, %v217_v41 }
 0x1b0   :  { %v293_v43 = vpop.f32.mrf.mxu1 }
 0x1b1   :  { %224 = vst.msk [vmem:[#allocation2] sm:$0xff] %vm48_vm1, %v218_v42 }
 0x1b2   :  { %v220_v44 = vpop.f32.mrf.mxu1 }
 0x1b3   :  { %v221_v45 = vadd.f32 %v246_v40, %v220_v44 }
 0x1b4   :  { %v294_v46 = vpop.f32.mrf.mxu1 }
 0x1b5   :  { %225 = vst.msk [vmem:[#allocation2 + $0x8] sm:$0xff] %vm48_vm1, %v221_v45 }
 0x1b6   :  { %325 = shalt.err (!%p322_p4)
}
 0x1b7   :  { %s339_s4 = smov 128   ;;  %s340_s20 = smov 8  }
 0x1b8   :  { %237 = dma.vmem_to_hbm [thread:$0]  %s232_s18, 256, %s424_s5, [#allocation3], %s339_s4, %s339_s4, %s340_s20  }
 0x1b9   :  { %334 = dma.done.wait [#allocation3], 256  }
 0x1ba   :  { %335 = vsyncadd [#allocation3], 4294967040 }
 0x1bb   :  { %241 = vsyncpa [#allocation3], 1 }

</bundles_post_ra>
